<compile_context>
chip_gen: v7x
topology: tpu7x:2x2x1
jax: 0.10.0
libtpu: 0.0.40
codegen_flags: <defaults>
</compile_context>

<pallas_src>
import jax
import jax.numpy as jnp
from jax import lax
from jax.experimental import pallas as pl
from jax.experimental.pallas import tpu as pltpu


_LANE = 128


def _round_up(x, m):
    return ((x + m - 1) // m) * m


def _sublane_multiple(itemsize):
    # Native packed-sublane row multiple per dtype width: f32 vreg is (8,128),
    # bf16 (16,128), int8/fp8 (32,128).
    return {4: 8, 2: 16, 1: 32}.get(itemsize, 8)


def _tpu_config():
    """Generation-gated block-size / scoped-VMEM budgets.

    Falls back to v7x-safe numbers (64 MiB physical VMEM, 2 TensorCores) if
    the hardware query is unavailable.
    """
    try:
        vmem = int(pltpu.get_tpu_info().vmem_capacity_bytes)
    except Exception:
        vmem = 64 * 1024 * 1024
    if vmem >= 100 * 1024 * 1024:
        # v5e / v6e: 128 MiB VMEM, single TensorCore -> bigger blocks, no
        # megacore row-tile cap.
        return dict(block_bytes=16 * 1024 * 1024,
                    vmem_limit_bytes=96 * 1024 * 1024,
                    multi_tc=False)
    # v7x-like: 64 MiB VMEM, 2 TensorCores.
    return dict(block_bytes=8 * 1024 * 1024,
                vmem_limit_bytes=48 * 1024 * 1024,
                multi_tc=True)


def _choose_tiles(n, d, itemsize, block_bytes, multi_tc):
    """Pick (row_tile, feature_tile) for an (n, d) problem."""
    sub = _sublane_multiple(itemsize)
    n_rounded = _round_up(n, sub)

    def cap_for_megacore(tn):
        # Keep >=2 row blocks so the "parallel" row axis can shard across the
        # two TensorCores on multi-TC parts.
        # TODO(synk): verify "parallel" really shards the row axis across TCs
        # on v7x; if not, drop this cap (or use pltpu.CORE_PARALLEL there).
        if multi_tc and n_rounded > sub:
            tn = min(tn, max(sub, _round_up((n_rounded + 1) // 2, sub)))
        return tn

    rows_full_d = (block_bytes // max(1, d * itemsize)) // sub * sub
    if rows_full_d >= sub:
        # Whole feature dim fits one block: grow the row tile to fill the
        # per-block byte budget (fewer grid steps -> less pipeline overhead).
        tn = min(rows_full_d, n_rounded)
        tn = max(cap_for_megacore(tn), sub)
        return tn, d

    # Feature dim must be tiled: equal 128-aligned splits bound the wasted
    # reads of the final tile to <128 lanes.
    tn = max(cap_for_megacore(min(512, n_rounded)), sub)
    num_d_tiles = pl.cdiv(tn * d * itemsize, block_bytes)
    td = _round_up(pl.cdiv(d, num_d_tiles), _LANE)
    td = min(td, _round_up(d, _LANE))
    if td >= d:
        td = d
    return tn, td


def _euclid_full_kernel(s_ref, q_ref, o_ref):
    # Whole feature dim in one VMEM block: single-step row reduce, no
    # accumulator, no masking (block feature dim == full array dim).
    diff = s_ref[...].astype(jnp.float32) - q_ref[...].astype(jnp.float32)
    o_ref[...] = jnp.sum(diff * diff, axis=1, keepdims=True)


def _make_euclid_tiled_kernel(d, td):
    """Kernel for a 2-D (row-block, feature-block) grid; td % 128 == 0."""
    groups = td // _LANE
    need_mask = (d % td) != 0

    def kernel(s_ref, q_ref, o_ref, acc_ref):
        j = pl.program_id(1)

        @pl.when(j == 0)
        def _():
            acc_ref[...] = jnp.zeros_like(acc_ref)

        diff = s_ref[...].astype(jnp.float32) - q_ref[...].astype(jnp.float32)
        sq = diff * diff
        if need_mask:
            # The final feature block reads past d: zero those lanes so OOB
            # garbage (possibly inf/NaN) never reaches the sum.
            col = j * td + lax.broadcasted_iota(jnp.int32, sq.shape, 1)
            sq = jnp.where(col < d, sq, 0.0)

        # Lane-dense accumulation: fold 128-wide lane groups with plain VPU
        # adds (128-aligned static slices = vreg-column selection, no XLU).
        part = sq[:, 0:_LANE]
        for g in range(1, groups):
            part = part + sq[:, g * _LANE:(g + 1) * _LANE]
        acc_ref[...] += part

        @pl.when(j == pl.num_programs(1) - 1)
        def _():
            # One cross-lane reduce + one output store per row block.
            o_ref[...] = jnp.sum(acc_ref[...], axis=1, keepdims=True)

    return kernel


def euclidean_classifier(support, query, *, tile_n=None, tile_d=None):
    """Squared-Euclidean row distances.

    support/query: arrays with matching shapes and leading dim N.
    Returns f32 logits of shape (N,).
    """
    n = support.shape[0]
    assert query.shape[0] == n, "support/query must share the leading dim"
    s2 = support.reshape(n, -1)
    q2 = query.reshape(n, -1)
    assert s2.shape == q2.shape, "support/query must flatten to the same (N, D)"
    d = s2.shape[1]
    itemsize = jnp.dtype(s2.dtype).itemsize
    sub = _sublane_multiple(itemsize)
    cfg = _tpu_config()

    tn, td = _choose_tiles(n, d, itemsize, cfg["block_bytes"], cfg["multi_tc"])
    if tile_n is not None:  # explicit override (tests / tuning)
        tn = max(sub, _round_up(min(tile_n, _round_up(n, sub)), sub))
    if tile_d is not None:
        if tile_d >= d:
            td = d
        else:
            td = min(_round_up(tile_d, _LANE), _round_up(d, _LANE))
            if td >= d:
                td = d

    grid_rows = pl.cdiv(n, tn)

    if td == d:
        # Single feature block per row block: 1-D grid, no accumulator.
        grid = (grid_rows,)
        kernel = _euclid_full_kernel
        in_specs = [pl.BlockSpec((tn, d), lambda i: (i, 0)),
                    pl.BlockSpec((tn, d), lambda i: (i, 0))]
        out_specs = pl.BlockSpec((tn, 1), lambda i: (i, 0))
        scratch_shapes = ()
        dims = ("parallel",)
    else:
        grid = (grid_rows, pl.cdiv(d, td))
        kernel = _make_euclid_tiled_kernel(d, td)
        in_specs = [pl.BlockSpec((tn, td), lambda i, j: (i, j)),
                    pl.BlockSpec((tn, td), lambda i, j: (i, j))]
        # Same output block for every j -> output stays resident across the
        # reduction axis; the actual running sum lives in the VMEM scratch.
        out_specs = pl.BlockSpec((tn, 1), lambda i, j: (i, 0))
        scratch_shapes = (pltpu.VMEM((tn, _LANE), jnp.float32),)
        dims = ("parallel", "arbitrary")

    out = pl.pallas_call(
        kernel,
        out_shape=jax.ShapeDtypeStruct((n, 1), jnp.float32),
        grid_spec=pltpu.PrefetchScalarGridSpec(
            num_scalar_prefetch=0,
            grid=grid,
            in_specs=in_specs,
            out_specs=out_specs,
            scratch_shapes=scratch_shapes,
        ),
        compiler_params=pltpu.CompilerParams(
            dimension_semantics=dims,
            vmem_limit_bytes=cfg["vmem_limit_bytes"],
        ),
    )(s2, q2)
    return out[:, 0]  # (N,) f32


if __name__ == "__main__":
    key = jax.random.PRNGKey(0)
    k1, k2, k3, k4 = jax.random.split(key, 4)

    # Case 1: shapes consistent with the module's use: N=8, features (4,16,16).
    support = jax.random.normal(k1, (8, 4, 16, 16), dtype=jnp.float32)
    query = jax.random.normal(k2, (8, 4, 16, 16), dtype=jnp.float32)
    logits = euclidean_classifier(support, query)
    jax.block_until_ready(logits)
    ref = jnp.sum((support.reshape(8, -1) - query.reshape(8, -1)) ** 2, axis=1)
    assert logits.shape == (8,)
    assert jnp.allclose(logits, ref, rtol=1e-5, atol=1e-5)

    # Case 2: bf16, non-divisible N and D, forced small tiles to exercise the
    # feature-tiled path (lane mask, lane-dense scratch accumulator, ragged
    # final row block handled without any wrapper-side padding).
    sup2 = jax.random.normal(k3, (22, 1000), dtype=jnp.bfloat16)
    qry2 = jax.random.normal(k4, (22, 1000), dtype=jnp.bfloat16)
    ref2 = jnp.sum(
        (sup2.astype(jnp.float32) - qry2.astype(jnp.float32)) ** 2, axis=1
    )
    logits2 = euclidean_classifier(sup2, qry2, tile_n=8, tile_d=128)
    jax.block_until_ready(logits2)
    assert logits2.shape == (22,)
    assert jnp.allclose(logits2, ref2, rtol=1e-3, atol=1e-2)

    # Case 3: same bf16 shape through the automatic tile chooser (full-D
    # single-step path with ragged N and non-128-multiple D, no padding).
    logits3 = euclidean_classifier(sup2, qry2)
    jax.block_until_ready(logits3)
    assert logits3.shape == (22,)
    assert jnp.allclose(logits3, ref2, rtol=1e-3, atol=1e-2)

    print("KERNEL_OK")
</pallas_src>

<mosaic_0001>
module attributes {stable_mosaic.version = 11 : i64} {
  func.func @_euclid_full_kernel(%arg0: i32, %arg1: memref<8x1024xf32, #tpu.memory_space<vmem>>, %arg2: memref<8x1024xf32, #tpu.memory_space<vmem>>, %arg3: memref<8x1xf32, #tpu.memory_space<vmem>>) attributes {dimension_semantics = [#tpu.dimension_semantics<parallel>], iteration_bounds = array<i64: 1>, scalar_prefetch = 0 : i64, scratch_operands = 0 : i64, tpu.core_type = #tpu.core_type<tc>, window_params = [{transform_indices = @transform_0, window_bounds = array<i64: 8, 1024>}, {transform_indices = @transform_1, window_bounds = array<i64: 8, 1024>}, {transform_indices = @transform_2, window_bounds = array<i64: 8, 1>}]} {
    %c0 = arith.constant 0 : index
    %c0_0 = arith.constant 0 : index
    %0 = vector.load %arg1[%c0, %c0_0] : memref<8x1024xf32, #tpu.memory_space<vmem>>, vector<8x1024xf32>
    %c0_1 = arith.constant 0 : index
    %c0_2 = arith.constant 0 : index
    %1 = vector.load %arg2[%c0_1, %c0_2] : memref<8x1024xf32, #tpu.memory_space<vmem>>, vector<8x1024xf32>
    %2 = arith.subf %0, %1 : vector<8x1024xf32>
    %3 = arith.mulf %2, %2 : vector<8x1024xf32>
    %cst = arith.constant dense<0.000000e+00> : vector<8xf32>
    %4 = vector.multi_reduction <add>, %3, %cst [1] : vector<8x1024xf32> to vector<8xf32>
    %5 = vector.shape_cast %4 : vector<8xf32> to vector<8x1xf32>
    %c0_3 = arith.constant 0 : index
    %c0_4 = arith.constant 0 : index
    %6 = vector.load %arg3[%c0_3, %c0_4] : memref<8x1xf32, #tpu.memory_space<vmem>>, vector<8x1xf32>
    tpu.vector_store %arg3[%c0_3, %c0_4], %5 {strides = array<i32>} : memref<8x1xf32, #tpu.memory_space<vmem>>, vector<8x1xf32>,
    return
  }
  func.func @transform_0(%arg0: i32) -> (i32, i32) {
    %c0_i32 = arith.constant 0 : i32
    %c0_i32_0 = arith.constant 0 : i32
    return %arg0, %c0_i32 : i32, i32
  }
  func.func @transform_1(%arg0: i32) -> (i32, i32) {
    %c0_i32 = arith.constant 0 : i32
    %c0_i32_0 = arith.constant 0 : i32
    return %arg0, %c0_i32 : i32, i32
  }
  func.func @transform_2(%arg0: i32) -> (i32, i32) {
    %c0_i32 = arith.constant 0 : i32
    %c0_i32_0 = arith.constant 0 : i32
    return %arg0, %c0_i32 : i32, i32
  }
}

</mosaic_0001>

<bundles_post_ra>
// kernel: tpu_custom_call.1
= control target key start
LH: loop header
LB: loop body
LE: loop exit
PB: predicated region body
PF: predicated region fallthrough
CT: control target
= control target key end

     0   :  { %7 = vsyncpa [#allocation3], 0  ;;  %s178_s0 = inlined_call_operand.hbm [shape: f32[8,1024], index: 0, kind: input, shape index: {}]   ;;  %s179_s1 = inlined_call_operand.hbm [shape: f32[8,1024], index: 1, kind: input, shape index: {}]   ;;  %s180_s2 = inlined_call_operand.vmem [shape: f32[8,1], index: 2, kind: output, shape index: {}]  }
   0x1   :  { %8 = vsyncpa [#allocation5], 0  ;;  %s134_s9 = smov [#allocation2]   ;;  %s135_s11 = smov [#allocation4]  }
   0x2   :  { %s15_s10 = sshll.u32 %s134_s9, 4  ;;  %s25_s12 = sshll.u32 %s135_s11, 4  ;;  %s16_s10 = int_to_ptr.vmem [resolvable:$true] %s15_s10  ;;  %s26_s12 = int_to_ptr.vmem [resolvable:$true] %s25_s12 }
   0x3   :  { %s86_s15 = scalar_lea.hbm %s178_s0, 1024 }
   0x4   :  { %p87_p0 = scmp.ne.s32.totalorder %s178_s0, %s86_s15  ;;  %p90_p1 = scmp.lt.u32.totalorder %s86_s15, %s178_s0 }
   0x6   :  { %p92_p2 = pnand %p90_p1, %p87_p0 }
   0x8   :  { %95 = shalt.err (!%p92_p2)
}
   0x9   :  { %s96_s20 = scalar_lea.vmem %s16_s10, 1024  ;;  %p101_p4 = scmp.lt.s32.totalorder %s16_s10, %s16_s10 }
   0xa   :  { %p97_p3 = scmp.ne.s32.totalorder %s16_s10, %s96_s20  ;;  %p102_p5 = scmp.lt.s32.totalorder %s96_s20, %s96_s20 }
   0xc   :  { %p103_p6 = por %p102_p5, %p101_p4 }
   0xe   :  { %p104_p7 = pnand %p103_p6, %p97_p3 }
  0x10   :  { %107 = shalt.err (!%p104_p7)
}
  0x11   :  { %18 = dma.hbm_to_vmem [thread:$0]  %s178_s0, 1024, %s16_s10, [#allocation3]  }
  0x12   :  { %s108_s25 = scalar_lea.hbm %s179_s1, 1024 }
  0x13   :  { %p109_p8 = scmp.ne.s32.totalorder %s179_s1, %s108_s25  ;;  %p112_p9 = scmp.lt.u32.totalorder %s108_s25, %s179_s1 }
  0x15   :  { %p114_p10 = pnand %p112_p9, %p109_p8 }
  0x17   :  { %117 = shalt.err (!%p114_p10)
}
  0x18   :  { %s118_s30 = scalar_lea.vmem %s26_s12, 1024  ;;  %p123_p12 = scmp.lt.s32.totalorder %s26_s12, %s26_s12 }
  0x19   :  { %p119_p11 = scmp.ne.s32.totalorder %s26_s12, %s118_s30  ;;  %p124_p13 = scmp.lt.s32.totalorder %s118_s30, %s118_s30 }
  0x1b   :  { %p125_p0 = por %p124_p13, %p123_p12 }
  0x1d   :  { %p126_p1 = pnand %p125_p0, %p119_p11 }
  0x1f   :  { %129 = shalt.err (!%p126_p1)
}
  0x20   :  { %28 = dma.hbm_to_vmem [thread:$0]  %s179_s1, 1024, %s26_s12, [#allocation5]  }
  0x21   :  { %130 = dma.done.wait [#allocation3], 1024  }
  0x22   :  { %131 = vsyncadd [#allocation3], 4294966272 }
  0x23   :  { %132 = dma.done.wait [#allocation5], 1024  }
  0x24   :  { %133 = vsyncadd [#allocation5], 4294966272  ;;  %v35_v0 = vld [vmem:[#allocation2] sm:$0xff]  ;;  %v36_v1 = vld [vmem:[#allocation2 + $0x8] sm:$0xff]  ;;  %vm76_vm0 = vcmask 7168  }
  0x25   :  { %v37_v2 = vld [vmem:[#allocation2 + $0x10] sm:$0xff]  ;;  %v38_v3 = vld [vmem:[#allocation2 + $0x18] sm:$0xff]  ;;  %v39_v4 = vld [vmem:[#allocation2 + $0x20] sm:$0xff] }
  0x26   :  { %v43_v5 = vld [vmem:[#allocation4] sm:$0xff]  ;;  %v44_v6 = vld [vmem:[#allocation4 + $0x8] sm:$0xff]  ;;  %v45_v7 = vld [vmem:[#allocation4 + $0x10] sm:$0xff] }
  0x27   :  { %v46_v8 = vld [vmem:[#allocation4 + $0x18] sm:$0xff]  ;;  %v51_v9 = vsub.f32 %v35_v0, %v43_v5  ;;  %v47_v10 = vld [vmem:[#allocation4 + $0x20] sm:$0xff]  ;;  %v52_v11 = vsub.f32 %v36_v1, %v44_v6  ;;  %v53_v12 = vsub.f32 %v37_v2, %v45_v7  ;;  %v40_v14 = vld [vmem:[#allocation2 + $0x28] sm:$0xff] }
  0x28   :  { %v54_v13 = vsub.f32 %v38_v3, %v46_v8  ;;  %v48_v15 = vld [vmem:[#allocation4 + $0x28] sm:$0xff]  ;;  %v55_v17 = vsub.f32 %v39_v4, %v47_v10  ;;  %v41_v20 = vld [vmem:[#allocation2 + $0x30] sm:$0xff]  ;;  %v42_v25 = vld [vmem:[#allocation2 + $0x38] sm:$0xff] }
  0x29   :  { %v59_v16 = vmul.f32 %v51_v9, %v51_v9  ;;  %v60_v18 = vmul.f32 %v52_v11, %v52_v11  ;;  %v61_v19 = vmul.f32 %v53_v12, %v53_v12  ;;  %v49_v21 = vld [vmem:[#allocation4 + $0x30] sm:$0xff]  ;;  %v56_v22 = vsub.f32 %v40_v14, %v48_v15  ;;  %v50_v26 = vld [vmem:[#allocation4 + $0x38] sm:$0xff] }
  0x2a   :  { %v62_v23 = vmul.f32 %v54_v13, %v54_v13  ;;  %v57_v27 = vsub.f32 %v41_v20, %v49_v21  ;;  %v63_v28 = vmul.f32 %v55_v17, %v55_v17  ;;  %v58_v30 = vsub.f32 %v42_v25, %v50_v26 }
  0x2b   :  { %v67_v24 = vadd.f32 %v60_v18, %v59_v16  ;;  %v64_v31 = vmul.f32 %v56_v22, %v56_v22 }
  0x2c   :  { %v65_v33 = vmul.f32 %v57_v27, %v57_v27  ;;  %v66_v35 = vmul.f32 %v58_v30, %v58_v30 }
  0x2d   :  { %v68_v29 = vadd.f32 %v67_v24, %v61_v19 }
  0x2f   :  { %v69_v32 = vadd.f32 %v68_v29, %v62_v23 }
  0x31   :  { %v70_v34 = vadd.f32 %v69_v32, %v63_v28 }
  0x33   :  { %v71_v36 = vadd.f32 %v70_v34, %v64_v31 }
  0x35   :  { %v72_v37 = vadd.f32 %v71_v36, %v65_v33 }
  0x37   :  { %v73_v38 = vadd.f32 %v72_v37, %v66_v35 }
  0x39   :  { %74 = vadd.xlane.f32.xlu0 %v73_v38 }
  0xc6   :  { %v75_v39 = vpop.xlane.xlu0 %74 }
  0xc7   :  { %77 = vst.msk [vmem:[%s180_s2] sm:$0xff] %vm76_vm0, %v75_v39 }
  0xc8   :  { %82 = vsyncpa [#allocation3], 1 }
  0xc9   :  { %83 = vsyncpa [#allocation5], 1 }

</bundles_post_ra>
